<compile_context>
chip_gen: v7x
topology: tpu7x:2x2x1
jax: 0.10.0
libtpu: 0.0.40
codegen_flags: <defaults>
</compile_context>

<pallas_src>
import functools
import itertools

import numpy as np

import jax
import jax.numpy as jnp
from jax import lax
from jax.experimental import pallas as pl
from jax.experimental.pallas import tpu as pltpu


def _pow(x, g):
    if g == 2.0:
        return x * x
    return x ** g


def _matcher_cost_kernel(logits_ref, boxes_ref, prop_ref, tgt_ids_ref,
                         tgt_boxes_t_ref, batched_ids_ref, c_ref, *,
                         alpha, gamma, w_class, w_bbox, w_giou):
    logits = logits_ref[0].astype(jnp.float32)        # (Q, C)
    boxes = boxes_ref[0].astype(jnp.float32)          # (Q, 4)
    pc = prop_ref[0]                                   # (Q, K) int32
    tgt_ids = tgt_ids_ref[...]                         # (1, T) int32
    tbt = tgt_boxes_t_ref[...].astype(jnp.float32)     # (8, T) rows 0..3 = cx,cy,w,h
    batched = batched_ids_ref[0]                       # (1, T) int32

    num_classes = logits.shape[1]
    num_tgt = tgt_ids.shape[1]

    # ---- gather-first focal classification cost ---------------------------
    # Exact 0/1 one-hot matmul on the MXU selects logits[:, tgt_ids]; the focal
    # math then runs only over the (Q, T) gathered slab instead of (Q, C).
    onehot = (lax.broadcasted_iota(jnp.int32, (num_classes, num_tgt), 0)
              == tgt_ids).astype(jnp.float32)          # (C, T)
    gl = jnp.dot(logits, onehot, preferred_element_type=jnp.float32)  # (Q, T)

    x = jnp.maximum(gl, -80.0)            # keep exp(-x) finite in f32
    e = jnp.exp(-x)
    lp = jnp.log(1.0 + e)                 # = -log(sigmoid(x))
    prob = 1.0 / (1.0 + e)                # sigmoid(x)
    pos_cost = alpha * _pow(1.0 - prob, gamma) * lp            # alpha*(1-p)^g*(-log p)
    neg_cost = (1.0 - alpha) * _pow(prob, gamma) * (x + lp)    # (1-a)*p^g*(-log(1-p))
    cost_class = pos_cost - neg_cost                   # (Q, T)

    # ---- L1 box cost (cxcywh, same as torch.cdist p=1) ---------------------
    ocx, ocy, ow, oh = boxes[:, 0:1], boxes[:, 1:2], boxes[:, 2:3], boxes[:, 3:4]
    tcx, tcy, tw, th = tbt[0:1, :], tbt[1:2, :], tbt[2:3, :], tbt[3:4, :]
    cost_bbox = (jnp.abs(ocx - tcx) + jnp.abs(ocy - tcy)
                 + jnp.abs(ow - tw) + jnp.abs(oh - th))  # (Q, T)

    # ---- pairwise GIoU (cxcywh -> xyxy) ------------------------------------
    ox0, oy0 = ocx - 0.5 * ow, ocy - 0.5 * oh
    ox1, oy1 = ocx + 0.5 * ow, ocy + 0.5 * oh
    tx0, ty0 = tcx - 0.5 * tw, tcy - 0.5 * th
    tx1, ty1 = tcx + 0.5 * tw, tcy + 0.5 * th
    area_o = (ox1 - ox0) * (oy1 - oy0)                  # (Q, 1)
    area_t = (tx1 - tx0) * (ty1 - ty0)                  # (1, T)
    iw = jnp.maximum(jnp.minimum(ox1, tx1) - jnp.maximum(ox0, tx0), 0.0)
    ih = jnp.maximum(jnp.minimum(oy1, ty1) - jnp.maximum(oy0, ty0), 0.0)
    inter = iw * ih
    union = area_o + area_t - inter
    ew = jnp.maximum(jnp.maximum(ox1, tx1) - jnp.minimum(ox0, tx0), 0.0)
    eh = jnp.maximum(jnp.maximum(oy1, ty1) - jnp.minimum(oy0, ty0), 0.0)
    enc = ew * eh
    # eps guards so degenerate boxes cannot poison the host-side assignment
    iou = inter / jnp.maximum(union, 1e-12)
    giou = iou - (enc - union) / jnp.maximum(enc, 1e-12)  # (Q, T)

    # ---- fused open-vocabulary validity masking ----------------------------
    valid = pc[:, 0:1] == batched                       # (Q, T)
    for k in range(1, pc.shape[1]):                     # K is small & static
        valid = jnp.logical_or(valid, pc[:, k:k + 1] == batched)
    giou_m = jnp.where(valid, giou, -1.0)
    valid_box = jnp.max(giou_m, axis=0, keepdims=True) > 0.0   # (1, T) any over Q
    valid = jnp.logical_and(valid, valid_box)

    cost = w_bbox * cost_bbox + w_class * cost_class + w_giou * (-giou)
    c_ref[0] = jnp.where(valid, cost, jnp.float32(99.0))


@functools.partial(jax.jit,
                   static_argnames=("alpha", "gamma", "w_class", "w_bbox", "w_giou"))
def _masked_cost_matrix(logits, boxes, prop_classes, tgt_ids_row, tgt_boxes_t,
                        batched_ids, *, alpha, gamma, w_class, w_bbox, w_giou):
    bs, q, c = logits.shape
    k = prop_classes.shape[-1]
    t_pad = tgt_ids_row.shape[-1]
    kernel = functools.partial(_matcher_cost_kernel, alpha=alpha, gamma=gamma,
                               w_class=w_class, w_bbox=w_bbox, w_giou=w_giou)
    grid_spec = pltpu.PrefetchScalarGridSpec(
        num_scalar_prefetch=0,
        grid=(bs,),
        in_specs=[
            pl.BlockSpec((1, q, c), lambda b: (b, 0, 0)),       # per-image logits
            pl.BlockSpec((1, q, 4), lambda b: (b, 0, 0)),       # per-image boxes
            pl.BlockSpec((1, q, k), lambda b: (b, 0, 0)),       # per-image proposal classes
            pl.BlockSpec((1, t_pad), lambda b: (0, 0)),         # all targets (lane-padded)
            pl.BlockSpec((8, t_pad), lambda b: (0, 0)),         # target boxes, 8-row slab
            pl.BlockSpec((1, 1, t_pad), lambda b: (b, 0, 0)),   # per-image batched ori ids
        ],
        out_specs=pl.BlockSpec((1, q, t_pad), lambda b: (b, 0, 0)),
    )
    flops = 2 * bs * q * c * t_pad + 64 * bs * q * t_pad
    bytes_accessed = 4 * (bs * q * (c + 4 + k + t_pad) + 10 * t_pad)
    return pl.pallas_call(
        kernel,
        out_shape=jax.ShapeDtypeStruct((bs, q, t_pad), jnp.float32),
        grid_spec=grid_spec,
        compiler_params=pltpu.CompilerParams(dimension_semantics=("parallel",)),
        cost_estimate=pl.CostEstimate(flops=flops,
                                      transcendentals=2 * bs * q * t_pad,
                                      bytes_accessed=bytes_accessed),
    )(logits, boxes, prop_classes, tgt_ids_row, tgt_boxes_t, batched_ids)


# TODO(synk): the Hungarian assignment (scipy.linear_sum_assignment) is an
# inherently sequential, data-dependent host-side algorithm with no clean Pallas
# equivalent; it is reproduced here (brute force, valid for the small demo sizes)
# on the host, matching the .cpu() path of the PyTorch reference.
def _linear_sum_assignment(cost):
    cost = np.asarray(cost, dtype=np.float64)
    n, m = cost.shape
    if m > n:
        c, r = _linear_sum_assignment(cost.T)
        return r, c
    best = None
    best_perm = None
    cols = np.arange(m)
    for perm in itertools.permutations(range(n), m):
        s = cost[list(perm), cols].sum()
        if best is None or s < best:
            best = s
            best_perm = perm
    rows = np.array(best_perm, dtype=np.int64)
    order = np.argsort(rows, kind="stable")
    return rows[order], cols[order].astype(np.int64)


def _split_true_pseudo(indices, targets):
    true_indices, pseudo_indices, pseudo_weight = [], [], []
    for i, (src_i, tgt_i) in enumerate(indices):
        pmask = np.asarray(targets[i]['pseudo_mask']).astype(bool)
        pseudo_idx = np.nonzero(pmask)[0]
        weight_i = np.asarray(targets[i]['weight'])
        p_mask = np.isin(tgt_i, pseudo_idx)
        pseudo_weight.append(weight_i[tgt_i[p_mask]])
        true_indices.append((src_i[~p_mask], tgt_i[~p_mask]))
        pseudo_indices.append((src_i[p_mask], tgt_i[p_mask]))
    pseudo_weight = (np.concatenate(pseudo_weight) if pseudo_weight
                     else np.zeros((0,), np.float32))
    return true_indices, pseudo_indices, pseudo_weight


class OVHungarianMatcher:
    def __init__(self, num_sample, cost_class=1.0, cost_bbox=1.0, cost_giou=1.0):
        assert cost_class != 0 or cost_bbox != 0 or cost_giou != 0, "all costs cant be 0"
        self.num_sample = num_sample
        self.cost_class = float(cost_class)
        self.cost_bbox = float(cost_bbox)
        self.cost_giou = float(cost_giou)

    def __call__(self, outputs, targets):
        alpha, gamma = 0.25, 2.0
        bs, num_queries = outputs['pred_logits'].shape[:2]
        logits = jnp.asarray(outputs['pred_logits'], jnp.float32)
        out_bbox = jnp.asarray(outputs['pred_boxes'], jnp.float32)

        assert 'proposal_classes' in outputs, 'proposal_classes????'
        pc = jnp.asarray(outputs['proposal_classes'], jnp.int32)
        if pc.ndim == 2:
            pc = pc[:, :, None]

        # ---- host-side target packing (tiny glue) --------------------------
        tgt_ids_np = np.concatenate(
            [np.asarray(v['labels']) for v in targets]).astype(np.int32)
        tgt_bbox_np = np.concatenate(
            [np.asarray(v['boxes']) for v in targets]).astype(np.float32)
        num_tgt = int(tgt_ids_np.shape[0])
        sizes = [int(v['boxes'].shape[0]) for v in targets]

        ori_np = np.concatenate(
            [np.asarray(v['ori_labels']) for v in targets]).astype(np.int32)
        ori_np = np.where(ori_np == -1, self.num_sample, ori_np).astype(np.int32)

        # Pad T up to a lane-dense multiple of 128 (unmasked vst on the output).
        t_pad = ((max(num_tgt, 1) + 127) // 128) * 128
        tgt_ids_row = np.zeros((1, t_pad), np.int32)
        tgt_ids_row[0, :num_tgt] = tgt_ids_np
        tgt_boxes_t = np.zeros((8, t_pad), np.float32)   # sublane-aligned 8-row slab
        tgt_boxes_t[2:4, :] = 1.0                        # dummy w=h=1 for padded cols
        tgt_boxes_t[:4, :num_tgt] = tgt_bbox_np.T
        batched = np.full((bs, 1, t_pad), -1, np.int32)  # ori id if target in image else -1
        col = 0
        for i, s in enumerate(sizes):
            batched[i, 0, col:col + s] = ori_np[col:col + s]
            col += s

        # ---- Pallas kernel: fused weighted cost + OV validity masking ------
        c_pad = _masked_cost_matrix(
            logits, out_bbox, pc,
            jnp.asarray(tgt_ids_row), jnp.asarray(tgt_boxes_t), jnp.asarray(batched),
            alpha=alpha, gamma=gamma, w_class=self.cost_class,
            w_bbox=self.cost_bbox, w_giou=self.cost_giou)
        # Single sync point: block on the kernel result and pull it to the host.
        c_np = np.asarray(jax.block_until_ready(c_pad))[:, :, :num_tgt]

        # ---- host-side Hungarian assignment on per-image slices ------------
        offsets = np.cumsum([0] + sizes)
        indices = []
        for i in range(bs):
            c_i = c_np[i, :, offsets[i]:offsets[i + 1]]
            if c_i.shape[1] == 0:
                indices.append((np.zeros((0,), np.int64), np.zeros((0,), np.int64)))
                continue
            row, col_idx = _linear_sum_assignment(c_i)
            keep = c_i[row, col_idx] < 99
            indices.append((row[keep].astype(np.int64), col_idx[keep].astype(np.int64)))

        outputs['ignore'] = []
        if 'pseudo_mask' in targets[0]:
            return _split_true_pseudo(indices, targets)
        return indices


if __name__ == "__main__":
    key = jax.random.PRNGKey(0)
    bs, num_queries, num_sample = 2, 8, 16
    num_classes = num_sample
    sizes = [3, 2]
    total_tgt = sum(sizes)

    k_logits, k_boxes, k_tb, k_lab, k_pc = jax.random.split(key, 5)
    pred_logits = jax.random.normal(k_logits, (bs, num_queries, num_classes), jnp.float32)
    pred_boxes = jax.nn.sigmoid(jax.random.normal(k_boxes, (bs, num_queries, 4), jnp.float32))

    label_pool = jax.random.randint(k_lab, (total_tgt,), 0, num_classes).astype(jnp.int32)
    box_pool = jax.nn.sigmoid(jax.random.normal(k_tb, (total_tgt, 4), jnp.float32))

    targets = []
    off = 0
    for i, s in enumerate(sizes):
        ori = np.array(label_pool[off:off + s], dtype=np.int32)   # writable host copy
        if i == 1:
            ori[-1] = -1  # exercise the -1 -> num_sample remap
        targets.append({
            'labels': label_pool[off:off + s],
            'boxes': box_pool[off:off + s],
            'ori_labels': jnp.asarray(ori, dtype=jnp.int32),
        })
        off += s

    # proposal_classes (bs, Q, K): column 0 cycles through each image's labels
    # so a subset of (query, target) pairs is valid.
    K = 2
    pc_list = []
    off = 0
    for i, s in enumerate(sizes):
        labs = np.array(label_pool[off:off + s])
        pci = np.array(jax.random.randint(jax.random.fold_in(k_pc, i),
                                          (num_queries, K), 0, num_sample),
                       dtype=np.int32)                            # writable host copy
        pci[:, 0] = np.resize(labs, (num_queries,))
        pc_list.append(pci)
        off += s
    proposal_classes = jnp.asarray(np.stack(pc_list, 0), dtype=jnp.int32)

    outputs = {
        'pred_logits': pred_logits,
        'pred_boxes': pred_boxes,
        'proposal_classes': proposal_classes,
    }

    matcher = OVHungarianMatcher(num_sample=num_sample,
                                 cost_class=2.0, cost_bbox=5.0, cost_giou=2.0)
    indices = matcher(outputs, targets)
    # sanity: well-formed (src, tgt) index pairs per image
    assert len(indices) == bs
    for src_i, tgt_i in indices:
        assert src_i.shape == tgt_i.shape
        if src_i.size:
            assert src_i.max() < num_queries
    print("KERNEL_OK")
</pallas_src>

<mosaic_0001>
module attributes {stable_mosaic.version = 11 : i64} {
  func.func @_matcher_cost_kernel(%arg0: i32, %arg1: memref<1x8x16xf32, #tpu.memory_space<vmem>>, %arg2: memref<1x8x4xf32, #tpu.memory_space<vmem>>, %arg3: memref<1x8x2xi32, #tpu.memory_space<vmem>>, %arg4: memref<1x128xi32, #tpu.memory_space<vmem>>, %arg5: memref<8x128xf32, #tpu.memory_space<vmem>>, %arg6: memref<1x1x128xi32, #tpu.memory_space<vmem>>, %arg7: memref<1x8x128xf32, #tpu.memory_space<vmem>>) attributes {dimension_semantics = [#tpu.dimension_semantics<parallel>], iteration_bounds = array<i64: 2>, scalar_prefetch = 0 : i64, scratch_operands = 0 : i64, tpu.core_type = #tpu.core_type<tc>, window_params = [{transform_indices = @transform_0, window_bounds = array<i64: 1, 8, 16>}, {transform_indices = @transform_1, window_bounds = array<i64: 1, 8, 4>}, {transform_indices = @transform_2, window_bounds = array<i64: 1, 8, 2>}, {pipeline_mode = #tpu.pipeline_mode<synchronous>, transform_indices = @transform_3, window_bounds = array<i64: 1, 128>}, {pipeline_mode = #tpu.pipeline_mode<synchronous>, transform_indices = @transform_4, window_bounds = array<i64: 8, 128>}, {transform_indices = @transform_5, window_bounds = array<i64: 1, 1, 128>}, {transform_indices = @transform_6, window_bounds = array<i64: 1, 8, 128>}]} {
    %c0 = arith.constant 0 : index
    %c0_0 = arith.constant 0 : index
    %c0_1 = arith.constant 0 : index
    %0 = vector.load %arg1[%c0, %c0_0, %c0_1] : memref<1x8x16xf32, #tpu.memory_space<vmem>>, vector<1x8x16xf32>
    %1 = vector.shape_cast %0 : vector<1x8x16xf32> to vector<8x16xf32>
    %c0_2 = arith.constant 0 : index
    %c0_3 = arith.constant 0 : index
    %c0_4 = arith.constant 0 : index
    %2 = vector.load %arg2[%c0_2, %c0_3, %c0_4] : memref<1x8x4xf32, #tpu.memory_space<vmem>>, vector<1x8x4xf32>
    %3 = vector.shape_cast %2 : vector<1x8x4xf32> to vector<8x4xf32>
    %c0_5 = arith.constant 0 : index
    %c0_6 = arith.constant 0 : index
    %c0_7 = arith.constant 0 : index
    %4 = vector.load %arg3[%c0_5, %c0_6, %c0_7] : memref<1x8x2xi32, #tpu.memory_space<vmem>>, vector<1x8x2xi32>
    %5 = vector.shape_cast %4 : vector<1x8x2xi32> to vector<8x2xi32>
    %c0_8 = arith.constant 0 : index
    %c0_9 = arith.constant 0 : index
    %6 = vector.load %arg4[%c0_8, %c0_9] : memref<1x128xi32, #tpu.memory_space<vmem>>, vector<1x128xi32>
    %c0_10 = arith.constant 0 : index
    %c0_11 = arith.constant 0 : index
    %7 = vector.load %arg5[%c0_10, %c0_11] : memref<8x128xf32, #tpu.memory_space<vmem>>, vector<8x128xf32>
    %c0_12 = arith.constant 0 : index
    %c0_13 = arith.constant 0 : index
    %c0_14 = arith.constant 0 : index
    %8 = vector.load %arg6[%c0_12, %c0_13, %c0_14] : memref<1x1x128xi32, #tpu.memory_space<vmem>>, vector<1x1x128xi32>
    %9 = vector.shape_cast %8 : vector<1x1x128xi32> to vector<1x128xi32>
    %10 = tpu.iota {dimensions = array<i32: 0>} : vector<16x128xi32>
    %11 = vector.broadcast %6 : vector<1x128xi32> to vector<16x128xi32>
    %12 = arith.cmpi eq, %10, %11 : vector<16x128xi32>
    %13 = arith.extui %12 : vector<16x128xi1> to vector<16x128xi32>
    %14 = arith.sitofp %13 : vector<16x128xi32> to vector<16x128xf32>
    %cst = arith.constant dense<0.000000e+00> : vector<8x128xf32>
    %15 = tpu.matmul %1, %14, %cst {dimension_numbers = #tpu.dot_dimension_numbers<[1], [0], [0], [1], [0, 0, 1, 1], [], []>} : vector<8x16xf32>, vector<16x128xf32>, vector<8x128xf32> -> vector<8x128xf32>
    %cst_15 = arith.constant -8.000000e+01 : f32
    %16 = vector.broadcast %cst_15 : f32 to vector<8x128xf32>
    %17 = arith.maximumf %15, %16 : vector<8x128xf32>
    %cst_16 = arith.constant 0.000000e+00 : f32
    %18 = vector.broadcast %cst_16 : f32 to vector<8x128xf32>
    %19 = arith.subf %18, %17 : vector<8x128xf32>
    %20 = math.exp %19 : vector<8x128xf32>
    %cst_17 = arith.constant 1.000000e+00 : f32
    %21 = vector.broadcast %cst_17 : f32 to vector<8x128xf32>
    %22 = arith.addf %21, %20 : vector<8x128xf32>
    %23 = math.log %22 : vector<8x128xf32>
    %cst_18 = arith.constant 1.000000e+00 : f32
    %24 = vector.broadcast %cst_18 : f32 to vector<8x128xf32>
    %25 = arith.addf %24, %20 : vector<8x128xf32>
    %cst_19 = arith.constant 1.000000e+00 : f32
    %26 = vector.broadcast %cst_19 : f32 to vector<8x128xf32>
    %27 = arith.divf %26, %25 : vector<8x128xf32>
    %cst_20 = arith.constant 1.000000e+00 : f32
    %28 = vector.broadcast %cst_20 : f32 to vector<8x128xf32>
    %29 = arith.subf %28, %27 : vector<8x128xf32>
    %30 = arith.mulf %29, %29 : vector<8x128xf32>
    %cst_21 = arith.constant 2.500000e-01 : f32
    %31 = vector.broadcast %cst_21 : f32 to vector<8x128xf32>
    %32 = arith.mulf %31, %30 : vector<8x128xf32>
    %33 = arith.mulf %32, %23 : vector<8x128xf32>
    %34 = arith.mulf %27, %27 : vector<8x128xf32>
    %cst_22 = arith.constant 7.500000e-01 : f32
    %35 = vector.broadcast %cst_22 : f32 to vector<8x128xf32>
    %36 = arith.mulf %35, %34 : vector<8x128xf32>
    %37 = arith.addf %17, %23 : vector<8x128xf32>
    %38 = arith.mulf %36, %37 : vector<8x128xf32>
    %39 = arith.subf %33, %38 : vector<8x128xf32>
    %40 = vector.extract_strided_slice %3 {offsets = [0, 0], sizes = [8, 1], strides = [1, 1]} : vector<8x4xf32> to vector<8x1xf32>
    %41 = vector.extract_strided_slice %3 {offsets = [0, 1], sizes = [8, 1], strides = [1, 1]} : vector<8x4xf32> to vector<8x1xf32>
    %42 = vector.extract_strided_slice %3 {offsets = [0, 2], sizes = [8, 1], strides = [1, 1]} : vector<8x4xf32> to vector<8x1xf32>
    %43 = vector.extract_strided_slice %3 {offsets = [0, 3], sizes = [8, 1], strides = [1, 1]} : vector<8x4xf32> to vector<8x1xf32>
    %44 = vector.extract_strided_slice %7 {offsets = [0, 0], sizes = [1, 128], strides = [1, 1]} : vector<8x128xf32> to vector<1x128xf32>
    %45 = vector.extract_strided_slice %7 {offsets = [1, 0], sizes = [1, 128], strides = [1, 1]} : vector<8x128xf32> to vector<1x128xf32>
    %46 = vector.extract_strided_slice %7 {offsets = [2, 0], sizes = [1, 128], strides = [1, 1]} : vector<8x128xf32> to vector<1x128xf32>
    %47 = vector.extract_strided_slice %7 {offsets = [3, 0], sizes = [1, 128], strides = [1, 1]} : vector<8x128xf32> to vector<1x128xf32>
    %48 = vector.broadcast %40 : vector<8x1xf32> to vector<8x128xf32>
    %49 = vector.broadcast %44 : vector<1x128xf32> to vector<8x128xf32>
    %50 = arith.subf %48, %49 : vector<8x128xf32>
    %51 = math.absf %50 : vector<8x128xf32>
    %52 = vector.broadcast %41 : vector<8x1xf32> to vector<8x128xf32>
    %53 = vector.broadcast %45 : vector<1x128xf32> to vector<8x128xf32>
    %54 = arith.subf %52, %53 : vector<8x128xf32>
    %55 = math.absf %54 : vector<8x128xf32>
    %56 = arith.addf %51, %55 : vector<8x128xf32>
    %57 = vector.broadcast %42 : vector<8x1xf32> to vector<8x128xf32>
    %58 = vector.broadcast %46 : vector<1x128xf32> to vector<8x128xf32>
    %59 = arith.subf %57, %58 : vector<8x128xf32>
    %60 = math.absf %59 : vector<8x128xf32>
    %61 = arith.addf %56, %60 : vector<8x128xf32>
    %62 = vector.broadcast %43 : vector<8x1xf32> to vector<8x128xf32>
    %63 = vector.broadcast %47 : vector<1x128xf32> to vector<8x128xf32>
    %64 = arith.subf %62, %63 : vector<8x128xf32>
    %65 = math.absf %64 : vector<8x128xf32>
    %66 = arith.addf %61, %65 : vector<8x128xf32>
    %cst_23 = arith.constant 5.000000e-01 : f32
    %67 = vector.broadcast %cst_23 : f32 to vector<8x1xf32>
    %68 = arith.mulf %67, %42 : vector<8x1xf32>
    %69 = arith.subf %40, %68 : vector<8x1xf32>
    %cst_24 = arith.constant 5.000000e-01 : f32
    %70 = vector.broadcast %cst_24 : f32 to vector<8x1xf32>
    %71 = arith.mulf %70, %43 : vector<8x1xf32>
    %72 = arith.subf %41, %71 : vector<8x1xf32>
    %cst_25 = arith.constant 5.000000e-01 : f32
    %73 = vector.broadcast %cst_25 : f32 to vector<8x1xf32>
    %74 = arith.mulf %73, %42 : vector<8x1xf32>
    %75 = arith.addf %40, %74 : vector<8x1xf32>
    %cst_26 = arith.constant 5.000000e-01 : f32
    %76 = vector.broadcast %cst_26 : f32 to vector<8x1xf32>
    %77 = arith.mulf %76, %43 : vector<8x1xf32>
    %78 = arith.addf %41, %77 : vector<8x1xf32>
    %cst_27 = arith.constant 5.000000e-01 : f32
    %79 = vector.broadcast %cst_27 : f32 to vector<1x128xf32>
    %80 = arith.mulf %79, %46 : vector<1x128xf32>
    %81 = arith.subf %44, %80 : vector<1x128xf32>
    %cst_28 = arith.constant 5.000000e-01 : f32
    %82 = vector.broadcast %cst_28 : f32 to vector<1x128xf32>
    %83 = arith.mulf %82, %47 : vector<1x128xf32>
    %84 = arith.subf %45, %83 : vector<1x128xf32>
    %cst_29 = arith.constant 5.000000e-01 : f32
    %85 = vector.broadcast %cst_29 : f32 to vector<1x128xf32>
    %86 = arith.mulf %85, %46 : vector<1x128xf32>
    %87 = arith.addf %44, %86 : vector<1x128xf32>
    %cst_30 = arith.constant 5.000000e-01 : f32
    %88 = vector.broadcast %cst_30 : f32 to vector<1x128xf32>
    %89 = arith.mulf %88, %47 : vector<1x128xf32>
    %90 = arith.addf %45, %89 : vector<1x128xf32>
    %91 = arith.subf %75, %69 : vector<8x1xf32>
    %92 = arith.subf %78, %72 : vector<8x1xf32>
    %93 = arith.mulf %91, %92 : vector<8x1xf32>
    %94 = arith.subf %87, %81 : vector<1x128xf32>
    %95 = arith.subf %90, %84 : vector<1x128xf32>
    %96 = arith.mulf %94, %95 : vector<1x128xf32>
    %97 = vector.broadcast %75 : vector<8x1xf32> to vector<8x128xf32>
    %98 = vector.broadcast %87 : vector<1x128xf32> to vector<8x128xf32>
    %99 = arith.minimumf %97, %98 : vector<8x128xf32>
    %100 = vector.broadcast %69 : vector<8x1xf32> to vector<8x128xf32>
    %101 = vector.broadcast %81 : vector<1x128xf32> to vector<8x128xf32>
    %102 = arith.maximumf %100, %101 : vector<8x128xf32>
    %103 = arith.subf %99, %102 : vector<8x128xf32>
    %cst_31 = arith.constant 0.000000e+00 : f32
    %104 = vector.broadcast %cst_31 : f32 to vector<8x128xf32>
    %105 = arith.maximumf %103, %104 : vector<8x128xf32>
    %106 = vector.broadcast %78 : vector<8x1xf32> to vector<8x128xf32>
    %107 = vector.broadcast %90 : vector<1x128xf32> to vector<8x128xf32>
    %108 = arith.minimumf %106, %107 : vector<8x128xf32>
    %109 = vector.broadcast %72 : vector<8x1xf32> to vector<8x128xf32>
    %110 = vector.broadcast %84 : vector<1x128xf32> to vector<8x128xf32>
    %111 = arith.maximumf %109, %110 : vector<8x128xf32>
    %112 = arith.subf %108, %111 : vector<8x128xf32>
    %cst_32 = arith.constant 0.000000e+00 : f32
    %113 = vector.broadcast %cst_32 : f32 to vector<8x128xf32>
    %114 = arith.maximumf %112, %113 : vector<8x128xf32>
    %115 = arith.mulf %105, %114 : vector<8x128xf32>
    %116 = vector.broadcast %93 : vector<8x1xf32> to vector<8x128xf32>
    %117 = vector.broadcast %96 : vector<1x128xf32> to vector<8x128xf32>
    %118 = arith.addf %116, %117 : vector<8x128xf32>
    %119 = arith.subf %118, %115 : vector<8x128xf32>
    %120 = vector.broadcast %75 : vector<8x1xf32> to vector<8x128xf32>
    %121 = vector.broadcast %87 : vector<1x128xf32> to vector<8x128xf32>
    %122 = arith.maximumf %120, %121 : vector<8x128xf32>
    %123 = vector.broadcast %69 : vector<8x1xf32> to vector<8x128xf32>
    %124 = vector.broadcast %81 : vector<1x128xf32> to vector<8x128xf32>
    %125 = arith.minimumf %123, %124 : vector<8x128xf32>
    %126 = arith.subf %122, %125 : vector<8x128xf32>
    %cst_33 = arith.constant 0.000000e+00 : f32
    %127 = vector.broadcast %cst_33 : f32 to vector<8x128xf32>
    %128 = arith.maximumf %126, %127 : vector<8x128xf32>
    %129 = vector.broadcast %78 : vector<8x1xf32> to vector<8x128xf32>
    %130 = vector.broadcast %90 : vector<1x128xf32> to vector<8x128xf32>
    %131 = arith.maximumf %129, %130 : vector<8x128xf32>
    %132 = vector.broadcast %72 : vector<8x1xf32> to vector<8x128xf32>
    %133 = vector.broadcast %84 : vector<1x128xf32> to vector<8x128xf32>
    %134 = arith.minimumf %132, %133 : vector<8x128xf32>
    %135 = arith.subf %131, %134 : vector<8x128xf32>
    %cst_34 = arith.constant 0.000000e+00 : f32
    %136 = vector.broadcast %cst_34 : f32 to vector<8x128xf32>
    %137 = arith.maximumf %135, %136 : vector<8x128xf32>
    %138 = arith.mulf %128, %137 : vector<8x128xf32>
    %cst_35 = arith.constant 9.99999996E-13 : f32
    %139 = vector.broadcast %cst_35 : f32 to vector<8x128xf32>
    %140 = arith.maximumf %119, %139 : vector<8x128xf32>
    %141 = arith.divf %115, %140 : vector<8x128xf32>
    %142 = arith.subf %138, %119 : vector<8x128xf32>
    %cst_36 = arith.constant 9.99999996E-13 : f32
    %143 = vector.broadcast %cst_36 : f32 to vector<8x128xf32>
    %144 = arith.maximumf %138, %143 : vector<8x128xf32>
    %145 = arith.divf %142, %144 : vector<8x128xf32>
    %146 = arith.subf %141, %145 : vector<8x128xf32>
    %147 = vector.extract_strided_slice %5 {offsets = [0, 0], sizes = [8, 1], strides = [1, 1]} : vector<8x2xi32> to vector<8x1xi32>
    %148 = vector.broadcast %147 : vector<8x1xi32> to vector<8x128xi32>
    %149 = vector.broadcast %9 : vector<1x128xi32> to vector<8x128xi32>
    %150 = arith.cmpi eq, %148, %149 : vector<8x128xi32>
    %151 = vector.extract_strided_slice %5 {offsets = [0, 1], sizes = [8, 1], strides = [1, 1]} : vector<8x2xi32> to vector<8x1xi32>
    %152 = vector.broadcast %151 : vector<8x1xi32> to vector<8x128xi32>
    %153 = vector.broadcast %9 : vector<1x128xi32> to vector<8x128xi32>
    %154 = arith.cmpi eq, %152, %153 : vector<8x128xi32>
    %155 = arith.ori %150, %154 : vector<8x128xi1>
    %cst_37 = arith.constant -1.000000e+00 : f32
    %156 = vector.broadcast %cst_37 : f32 to vector<8x128xf32>
    %157 = arith.select %155, %146, %156 : vector<8x128xi1>, vector<8x128xf32>
    %cst_38 = arith.constant dense<0xFF800000> : vector<128xf32>
    %158 = vector.multi_reduction <maximumf>, %157, %cst_38 [0] : vector<8x128xf32> to vector<128xf32>
    %159 = vector.shape_cast %158 : vector<128xf32> to vector<1x128xf32>
    %cst_39 = arith.constant 0.000000e+00 : f32
    %160 = vector.broadcast %cst_39 : f32 to vector<1x128xf32>
    %161 = arith.cmpf ogt, %159, %160 : vector<1x128xf32>
    %162 = vector.broadcast %161 : vector<1x128xi1> to vector<8x128xi1>
    %163 = arith.andi %155, %162 : vector<8x128xi1>
    %cst_40 = arith.constant 5.000000e+00 : f32
    %164 = vector.broadcast %cst_40 : f32 to vector<8x128xf32>
    %165 = arith.mulf %164, %66 : vector<8x128xf32>
    %cst_41 = arith.constant 2.000000e+00 : f32
    %166 = vector.broadcast %cst_41 : f32 to vector<8x128xf32>
    %167 = arith.mulf %166, %39 : vector<8x128xf32>
    %168 = arith.addf %165, %167 : vector<8x128xf32>
    %cst_42 = arith.constant 0.000000e+00 : f32
    %169 = vector.broadcast %cst_42 : f32 to vector<8x128xf32>
    %170 = arith.subf %169, %146 : vector<8x128xf32>
    %cst_43 = arith.constant 2.000000e+00 : f32
    %171 = vector.broadcast %cst_43 : f32 to vector<8x128xf32>
    %172 = arith.mulf %171, %170 : vector<8x128xf32>
    %173 = arith.addf %168, %172 : vector<8x128xf32>
    %cst_44 = arith.constant 9.900000e+01 : f32
    %174 = vector.broadcast %cst_44 : f32 to vector<8x128xf32>
    %175 = arith.select %163, %173, %174 : vector<8x128xi1>, vector<8x128xf32>
    %c0_45 = arith.constant 0 : index
    %c0_46 = arith.constant 0 : index
    %c0_47 = arith.constant 0 : index
    %176 = vector.load %arg7[%c0_45, %c0_46, %c0_47] : memref<1x8x128xf32, #tpu.memory_space<vmem>>, vector<1x8x128xf32>
    %177 = vector.shape_cast %176 : vector<1x8x128xf32> to vector<8x128xf32>
    %178 = vector.shape_cast %175 : vector<8x128xf32> to vector<1x8x128xf32>
    tpu.vector_store %arg7[%c0_45, %c0_46, %c0_47], %178 {strides = array<i32>} : memref<1x8x128xf32, #tpu.memory_space<vmem>>, vector<1x8x128xf32>,
    return
  }
  func.func @transform_0(%arg0: i32) -> (i32, i32, i32) {
    %c0_i32 = arith.constant 0 : i32
    %c0_i32_0 = arith.constant 0 : i32
    %c0_i32_1 = arith.constant 0 : i32
    return %arg0, %c0_i32, %c0_i32_0 : i32, i32, i32
  }
  func.func @transform_1(%arg0: i32) -> (i32, i32, i32) {
    %c0_i32 = arith.constant 0 : i32
    %c0_i32_0 = arith.constant 0 : i32
    %c0_i32_1 = arith.constant 0 : i32
    return %arg0, %c0_i32, %c0_i32_0 : i32, i32, i32
  }
  func.func @transform_2(%arg0: i32) -> (i32, i32, i32) {
    %c0_i32 = arith.constant 0 : i32
    %c0_i32_0 = arith.constant 0 : i32
    %c0_i32_1 = arith.constant 0 : i32
    return %arg0, %c0_i32, %c0_i32_0 : i32, i32, i32
  }
  func.func @transform_3(%arg0: i32) -> (i32, i32) {
    %c0_i32 = arith.constant 0 : i32
    %c0_i32_0 = arith.constant 0 : i32
    %c0_i32_1 = arith.constant 0 : i32
    return %c0_i32, %c0_i32_0 : i32, i32
  }
  func.func @transform_4(%arg0: i32) -> (i32, i32) {
    %c0_i32 = arith.constant 0 : i32
    %c0_i32_0 = arith.constant 0 : i32
    %c0_i32_1 = arith.constant 0 : i32
    return %c0_i32, %c0_i32_0 : i32, i32
  }
  func.func @transform_5(%arg0: i32) -> (i32, i32, i32) {
    %c0_i32 = arith.constant 0 : i32
    %c0_i32_0 = arith.constant 0 : i32
    %c0_i32_1 = arith.constant 0 : i32
    return %arg0, %c0_i32, %c0_i32_0 : i32, i32, i32
  }
  func.func @transform_6(%arg0: i32) -> (i32, i32, i32) {
    %c0_i32 = arith.constant 0 : i32
    %c0_i32_0 = arith.constant 0 : i32
    %c0_i32_1 = arith.constant 0 : i32
    return %arg0, %c0_i32, %c0_i32_0 : i32, i32, i32
  }
}

</mosaic_0001>

<bundles_post_ra>
// kernel: _masked_cost_matrix.1
= control target key start
LH: loop header
LB: loop body
LE: loop exit
PB: predicated region body
PF: predicated region fallthrough
CT: control target
= control target key end

     0   :  { %11 = vsyncpa [#allocation3], 0  ;;  %s1045_s0 = inlined_call_operand.vmem [shape: f32[2,8,16], index: 0, kind: input, shape index: {}]   ;;  %s1046_s1 = inlined_call_operand.vmem [shape: f32[2,8,4], index: 1, kind: input, shape index: {}]   ;;  %s1047_s2 = inlined_call_operand.vmem [shape: s32[2,8,2], index: 2, kind: input, shape index: {}]   ;;  %s1048_s3 = inlined_call_operand.vmem [shape: s32[1,128], index: 3, kind: input, shape index: {}]   ;;  %s1049_s4 = inlined_call_operand.vmem [shape: f32[8,128], index: 4, kind: input, shape index: {}]   ;;  %s1050_s5 = inlined_call_operand.vmem [shape: s32[2,1,128], index: 5, kind: input, shape index: {}]   ;;  %s1051_s6 = inlined_call_operand.hbm [shape: f32[2,8,128], index: 6, kind: output, shape index: {}]  }
   0x1   :  { %13 = vsyncpa [#allocation3 + $0x1], 0  ;;  %s894_s21 = smov 0   ;;  %s896_s22 = smov 0  }
   0x2   :  { %s898_s23 = smov 0   ;;  %s900_s24 = smov 0  }
   0x3 LB: > { %s915_s25 = sadd.s32 4294967295, %s846_s24   ;;  %s683_s26 = sadd.s32 4294967294, %s846_s24   ;;  %s846_s24 = sphi %s900_s24, %s1059_s24   ;;  %s842_s23 = sphi %s898_s23, %s1058_s23   ;;  %s838_s22 = sphi %s896_s22, %s1057_s22   ;;  %s834_s21 = sphi %s894_s21, %s1056_s21  }
   0x4   : > { %s919_s27 = sadd.s32 1, %s846_s24   ;;  %s172_s28 = sadd.s32 1, %s842_s23 }
   0x5   : > { %s169_s29 = ssub.s32 %s846_s24, %s919_s27  ;;  %p182_p0 = scmp.ne.s32.totalorder %s842_s23, %s838_s22 }
   0x6   : > { %p170_p1 = scmp.eq.s32.totalorder %s169_s29, 0  ;;  %p183_p2 = scmp.eq.s32.totalorder %s915_s25, 1 }
   0x7   : > { %p188_p3 = scmp.ne.s32.totalorder %s838_s22, %s834_s21  ;;  %p189_p4 = scmp.eq.s32.totalorder %s683_s26, 1 }
   0x8   : > { %s930_s30 = scalar_select %p170_p1, %s842_s23, %s172_s28  }
   0x9   : > { %p932_p5 = por %p183_p2, %p182_p0  ;;  %p936_p6 = por %p189_p4, %p188_p3 }
   0xa   : > { %p686_p7 = scmp.ge.s32.totalorder %s846_s24, 1  ;;  %p240_p8 = scmp.lt.s32.totalorder %s846_s24, 3 }
   0xc   : > { %p241_p9 = pnand %p686_p7, %p240_p8 }
   0xd   : > { %p280_p10 = scmp.lt.s32.totalorder (!%p241_p9), %s915_s25, 1  ;;  %v301_v0 = vlaneseq (!%p241_p9)  ;;  %v848_v1 = vmov (!%p241_p9), 0.0|0.0   ;;  %v691_v2 = vld [vmem:[%s1048_s3] ss:$0 sm:$0xff] (!%p241_p9)  ;;  %vm849_vm0 = vmmov (!%p241_p9), 0   ;;  %v850_v4 = vmov (!%p241_p9), 0.0  }
   0xe   : > { %244 = sbr.rel (%p241_p9) target bundleno = 443 (0x1bb), region = 44  ;;  %712 = vmatprep.subr.bf16.mxu0 (!%p241_p9), %v848_v1  ;;  %709 = vmatprep.mubr.msk.f32.mxu0 (!%p241_p9), %vm849_vm0, %v850_v4  ;;  %v851_v5 = vmov (!%p241_p9), 0   ;;  %v852_v6 = vmov (!%p241_p9), 1   ;;  %v853_v10 = vmov (!%p241_p9), 1.0|1.0   ;;  %vm314_vm4 = vcmask (!%p241_p9), 130048  }
   0xf   : > { %v949_v3 = vshrl.u32 (!%p241_p9), %v301_v0, 7  ;;  %764 = vset.pattern.permute.xlu1 (!%p241_p9), %v851_v5  ;;  %765 = vset.pattern.permute.xlu0 (!%p241_p9), %v852_v6  ;;  %s854_s19 = smov (!%p241_p9), 126   ;;  %s855_s20 = smov (!%p241_p9), 127   ;;  %v856_v21 = vmov (!%p241_p9), 2   ;;  %v857_v22 = vmov (!%p241_p9), 3   ;;  %v969_v24 = vld [vmem:[%s1049_s4] sm:$0xff] (!%p241_p9) }
  0x10   : > { %v457_v27 = vmul.f32 (!%p241_p9), 0.5, %v969_v24  ;;  %s699_s16 = sshll.u32 (!%p241_p9), %s915_s25, 7 }
  0x11   : > { %v303_v7 = vadd.s32 (!%p241_p9), 8, %v949_v3  ;;  %vm308_vm1 = vcmp.eq.s32.totalorder (!%p241_p9), %v949_v3, %v691_v2  ;;  %v423_v32 = vsub.s32 (!%p241_p9), 1, %v949_v3  ;;  %v413_v33 = vsub.s32 (!%p241_p9), 0, %v949_v3  ;;  %s1003_s26 = scalar_lea.hbm (!%p241_p9), %s1051_s6, %s699_s16 }
  0x12   : > { %v459_v30 = vrot.slane (!%p241_p9), %v457_v27, 2 }
  0x13   : > { %vm309_vm2 = vcmp.eq.s32.totalorder (!%p241_p9), %v303_v7, %v691_v2 }
  0x14   : > { %vm713_vm3 = vmpackc.low (!%p241_p9), %vm309_vm2, %vm308_vm1  ;;  %v461_v31 = vsub.f32 (!%p241_p9), %v969_v24, %v459_v30  ;;  %v462_v34 = vadd.f32 (!%p241_p9), %v459_v30, %v969_v24 }
  0x15   : > { %s947_s11 = scalar_select %p280_p10, %s915_s25, 1  ;;  %714 = vmatpush3.bf16.msk.msra.mxu0 %vm713_vm3, %v853_v10  ;;  %v414_v10 = vrot.slane %v969_v24, %v413_v33 }
  0x16   : > { %v512_v35 = vrot.slane %v461_v31, %v423_v32  ;;  %v492_v37 = vrot.slane %v461_v31, %v413_v33  ;;  %v503_v38 = vrot.slane %v462_v34, %v423_v32  ;;  %v469_v40 = vsub.f32 %v462_v34, %v461_v31 }
  0x17   : > { %s688_s12 = sshll.u32 %s947_s11, 3  ;;  %v482_v41 = vrot.slane %v462_v34, %v413_v33  ;;  %s294_s14 = scalar_lea.vmem %s1050_s5, %s947_s11 }
  0x18   : > { %s287_s15 = scalar_lea.vmem %s1046_s1, %s688_s12  ;;  %s283_s18 = scalar_lea.vmem %s1045_s0, %s688_s12  ;;  %v471_v47 = vrot.slane %v469_v40, 1 }
  0x19   : > { %v296_v8 = vld [vmem:[%s287_s15] sm:$0xff]  ;;  %s291_s29 = scalar_lea.vmem %s1047_s2, %s688_s12  ;;  %s277_s11 = sand.u32 1, %s838_s22  }
  0x1a   : > { %v450_v9 = vmul.f32 0.5, %v296_v8  ;;  %v295_v11 = vld [vmem:[%s283_s18] sm:$0xff]  ;;  %v473_v56 = vmul.f32 %v471_v47, %v469_v40  ;;  %s687_s15 = sshll.u32 %s277_s11, 3  ;;  %s578_s25 = scalar_lea.sflag [#allocation3], %s277_s11 }
  0x1b   : > { %710 = vmatmul.mubr.msk.f32.vlgmr.msra.gmra.mrb[0].mxu0 %vm314_vm4, %v295_v11  ;;  %v297_v16 = vld [vmem:[%s291_s29] sm:$0xff]  ;;  %v424_v11 = vrot.slane %v969_v24, %v423_v32  ;;  %s279_s17 = scalar_lea.vmem [#allocation2], %s687_s15  ;;  %s858_s29 = smov [#allocation2]  }
  0x1c   : > { %452 = vrot.lane.b32.xlu0 %v450_v9, %s854_s19  ;;  %v525_v61 = vrot.slane %v473_v56, %v413_v33  ;;  %s591_s18 = sshll.u32 %s279_s17, 4  ;;  %s788_s9 = sshll.u32 %s858_s29, 4  ;;  %s1005_s18 = int_to_ptr.vmem [resolvable:$true] %s591_s18  ;;  %s789_s9 = int_to_ptr.vmem [resolvable:$false] %s788_s9 }
  0x1d   : > { %s784_s28 = scalar_lea.vmem %s1005_s18, 128  ;;  %s790_s10 = scalar_lea.vmem %s789_s9, 256 }
  0x1e   : > { %p785_p11 = scmp.ne.s32.totalorder %s1005_s18, %s784_s28  ;;  %p791_p0 = scmp.lt.s32.totalorder %s1005_s18, %s789_s9 }
  0x1f   : > { %p792_p1 = scmp.lt.s32.totalorder %s790_s10, %s784_s28 }
  0x20   : > { %p786_p12 = pnand %p785_p11, %p932_p5 }
  0x21   : > { %p793_p2 = por %p792_p1, %p791_p0 }
  0x22   : > { %p787_p13 = pneg %p786_p12 }
  0x24   : > { %p794_p3 = pnand %p793_p2, %p787_p13 }
  0x8e   : > { %v453_v12 = vpop.permute.xlu0 %452 }
  0x8f   : > { %v455_v13 = vsub.f32 %v296_v8, %v453_v12  ;;  %v456_v14 = vadd.f32 %v453_v12, %v296_v8 }
  0x91   : > { %476 = vperm.xlu1 %764, %v456_v14   ;;  %v463_v15 = vsub.f32 %v456_v14, %v455_v13 }
  0x93   : > { %465 = vrot.lane.b32.xlu0 %v463_v15, %s855_s20 }
  0x95   : > { %486 = vperm.xlu1 %764, %v455_v13  }
  0x97   : > { %497 = vperm.xlu0 %765, %v456_v14  }
  0x99   : > { %766 = vset.pattern.permute.xlu1 %v852_v6 }
  0x9a   : > { %506 = vperm.xlu1 %766, %v455_v13   ;;  %v434_v13 = vsub.s32 2, %v949_v3 }
  0x9b   : > { %768 = vset.pattern.permute.xlu0 %v851_v5 }
  0x9c   : > { %546 = vperm.xlu0 %768, %v297_v16  }
  0x9e   : > { %767 = vset.pattern.permute.xlu1 %v851_v5 }
  0xa0   : > { %771 = vset.pattern.permute.xlu0 %v852_v6 }
  0xa1   : > { %418 = vperm.xlu0 %771, %v296_v8  }
  0xee   : > { %v963_v17 = vpop.f32.mrb[0].mxu0 }
  0xef   : > { %v711_v18 = vpop.f32.mrb[1].mxu0  ;;  %v388_v23 = vmax.f32 %v963_v17, -80.0 }
  0xf1   : > { %v389_v26 = vsub.f32 0.0, %v388_v23 }
  0xf3   : > { %v390_v28 = vmul.f32 1.442695, %v389_v26  ;;  %v445_v26 = vsub.s32 3, %v949_v3 }
  0xf5   : > { %774 = vpow2.f32 %v390_v28  ;;  %v697_v28 = vld [vmem:[%s294_s14] ss:$0 sm:$0xff] }
  0xff   : > { %v775_v45 = vpop.eup %774 }
 0x100   : > { %v392_v53 = vadd.f32 1.0, %v775_v45 }
 0x102   : > { %776 = vrcp.f32 %v392_v53 }
 0x103   : > { %778 = vlog2.f32 %v392_v53 }
 0x105   : > { %v466_v19 = vpop.permute.xlu0 %465 }
 0x106   : > { %v468_v20 = vmul.f32 %v466_v19, %v463_v15 }
 0x108   : > { %519 = vperm.xlu1 %767, %v468_v20   ;;  %v435_v20 = vrot.slane %v969_v24, %v434_v13 }
 0x10c   : > { %769 = vset.pattern.permute.xlu1 %v852_v6  ;;  %v777_v9 = vpop.eup %776 }
 0x10d   : > { %554 = vperm.xlu1 %769, %v297_v16   ;;  %v397_v14 = vsub.f32 1.0, %v777_v9  ;;  %v779_v15 = vpop.eup %778 }
 0x110   : > { %v477_v25 = vpop.permute.xlu1 %476 }
 0x111   : > { %770 = vset.pattern.permute.xlu1 %v851_v5  ;;  %v528_v48 = vmax.f32 %v477_v25, %v482_v41  ;;  %v483_v54 = vmin.f32 %v477_v25, %v482_v41  ;;  %v401_v25 = vmul.f32 %v777_v9, %v777_v9 }
 0x112   : > { %408 = vperm.xlu1 %770, %v296_v8  }
 0x114   : > { %v487_v29 = vpop.permute.xlu1 %486 }
 0x115   : > { %v529_v43 = vmin.f32 %v487_v29, %v492_v37  ;;  %v493_v50 = vmax.f32 %v487_v29, %v492_v37 }
 0x116   : > { %772 = vset.pattern.permute.xlu1 %v856_v21  ;;  %v498_v39 = vpop.permute.xlu0 %497  ;;  %v394_v21 = vmul.f32 0.6931472, %v779_v15 }
 0x117   : > { %429 = vperm.xlu1 %772, %v296_v8   ;;  %v532_v44 = vmax.f32 %v498_v39, %v503_v38  ;;  %v504_v51 = vmin.f32 %v498_v39, %v503_v38  ;;  %v530_v52 = vsub.f32 %v528_v48, %v529_v43  ;;  %v494_v58 = vsub.f32 %v483_v54, %v493_v50 }
 0x118   : > { %v403_v37 = vadd.f32 %v394_v21, %v388_v23  ;;  %v446_v38 = vrot.slane %v969_v24, %v445_v26 }
 0x119   : > { %v507_v36 = vpop.permute.xlu1 %506  ;;  %v531_v59 = vmax.f32 %v530_v52, 0.0  ;;  %v495_v63 = vmax.f32 %v494_v58, 0.0 }
 0x11a   : > { %v533_v42 = vmin.f32 %v507_v36, %v512_v35  ;;  %v513_v46 = vmax.f32 %v507_v36, %v512_v35  ;;  %v402_v36 = vmul.f32 0.75, %v401_v25 }
 0x11b   : > { %773 = vset.pattern.permute.xlu1 %v857_v22  ;;  %v547_v5 = vpop.permute.xlu0 %546  ;;  %v398_v22 = vmul.f32 %v397_v14, %v397_v14 }
 0x11c   : > { %440 = vperm.xlu1 %773, %v296_v8   ;;  %v534_v49 = vsub.f32 %v532_v44, %v533_v42  ;;  %v514_v55 = vsub.f32 %v504_v51, %v513_v46  ;;  %vm552_vm6 = vcmp.eq.s32.totalorder %v547_v5, %v697_v28  ;;  %v404_v45 = vmul.f32 %v403_v37, %v402_v36 }
 0x11d   : > { %v399_v35 = vmul.f32 0.25, %v398_v22 }
 0x11e   : > { %v535_v57 = vmax.f32 %v534_v49, 0.0  ;;  %v515_v60 = vmax.f32 %v514_v55, 0.0 }
 0x11f   : > { %v400_v44 = vmul.f32 %v399_v35, %v394_v21 }
 0x120   : > { %v536_v62 = vmul.f32 %v535_v57, %v531_v59  ;;  %v516_v1 = vmul.f32 %v515_v60, %v495_v63  ;;  %v419_v12 = vpop.permute.xlu0 %418 }
 0x121   : > { %v425_v19 = vsub.f32 %v419_v12, %v424_v11  ;;  %v405_v49 = vsub.f32 %v400_v44, %v404_v45 }
 0x122   : > { %v541_v4 = vmax.f32 %v536_v62, 1e-12 }
 0x123   : > { %v426_v30 = vand.u32 2147483647, %v425_v19  ;;  %v570_v54 = vmul.f32 2.0, %v405_v49 }
 0x124   : > { %780 = vrcp.f32 %v541_v4 }
 0x12e   : > { %v781_v32 = vpop.eup %780 }
 0x187   : > { %v520_v0 = vpop.permute.xlu1 %519 }
 0x188   : > { %v526_v2 = vadd.f32 %v525_v61, %v520_v0 }
 0x18a   : > { %v527_v6 = vsub.f32 %v526_v2, %v516_v1 }
 0x18c   : > { %v537_v7 = vmax.f32 %v527_v6, 1e-12  ;;  %v555_v8 = vpop.permute.xlu1 %554  ;;  %v540_v27 = vsub.f32 %v536_v62, %v527_v6 }
 0x18d   : > { %vm556_vm5 = vcmp.eq.s32.totalorder %v555_v8, %v697_v28 }
 0x18e   : > { %782 = vrcp.f32 %v537_v7  ;;  %v543_v40 = vmul.f32 %v781_v32, %v540_v27  ;;  %vm990_vm7 = vmor %vm552_vm6, %vm556_vm5 }
 0x191   : > { %v409_v16 = vpop.permute.xlu1 %408 }
 0x192   : > { %v415_v18 = vsub.f32 %v409_v16, %v414_v10 }
 0x194   : > { %v416_v29 = vand.u32 2147483647, %v415_v18 }
 0x196   : > { %v430_v31 = vpop.permute.xlu1 %429  ;;  %v427_v3 = vadd.f32 %v426_v30, %v416_v29 }
 0x197   : > { %v436_v33 = vsub.f32 %v430_v31, %v435_v20 }
 0x198   : > { %v783_v34 = vpop.eup %782 }
 0x199   : > { %v539_v39 = vmul.f32 %v783_v34, %v516_v1  ;;  %v437_v41 = vand.u32 2147483647, %v436_v33 }
 0x19b   : > { %v544_v42 = vsub.f32 %v539_v39, %v543_v40  ;;  %v441_v43 = vpop.permute.xlu1 %440  ;;  %v438_v24 = vadd.f32 %v437_v41, %v427_v3 }
 0x19c   : > { %v447_v47 = vsub.f32 %v441_v43, %v446_v38 }
 0x19d   : > { %v558_v17 = vsel %vm990_vm7, %v544_v42, -1.0  ;;  %v572_v55 = vsub.f32 0.0, %v544_v42 }
 0x19e   : > { %v559_v23 = vrot.slane %v558_v17, 4  ;;  %v448_v48 = vand.u32 2147483647, %v447_v47 }
 0x19f   : > { %v573_v59 = vmul.f32 2.0, %v572_v55 }
 0x1a0   : > { %v560_v50 = vmax.f32 %v558_v17, %v559_v23  ;;  %v449_v51 = vadd.f32 %v448_v48, %v438_v24 }
 0x1a2   : > { %v561_v52 = vrot.slane %v560_v50, 2  ;;  %v569_v53 = vmul.f32 5.0, %v449_v51 }
 0x1a4   : > { %v562_v56 = vmax.f32 %v560_v50, %v561_v52  ;;  %v571_v58 = vadd.f32 %v570_v54, %v569_v53 }
 0x1a6   : > { %v563_v57 = vrot.slane %v562_v56, 1  ;;  %v574_v61 = vadd.f32 %v573_v59, %v571_v58 }
 0x1a8   : > { %v564_v60 = vmax.f32 %v562_v56, %v563_v57 }
 0x1aa   : > { %vm565_vm8 = vcmp.gt.f32.partialorder %v564_v60, 0.0 }
 0x1ab   : > { %vm568_vm9 = vmand %vm990_vm7, %vm565_vm8 }
 0x1ac   : > { %v575_v62 = vsel %vm568_vm9, %v574_v61, 99.0 }
 0x1ad   : > { %576 = vst [vmem:[%s279_s17] sm:$0xff] %v575_v62 }
 0x1ae   : > { %797 = shalt.err (!%p794_p3)
}
 0x1af   : > { %s798_s12 = scalar_lea.hbm %s1003_s26, 128  ;;  %s802_s11 = scalar_lea.hbm %s1051_s6, 256 }
 0x1b0   : > { %p799_p4 = scmp.ne.s32.totalorder %s1003_s26, %s798_s12  ;;  %p803_p9 = scmp.lt.u32.totalorder %s1003_s26, %s1051_s6 }
 0x1b1   : > { %p804_p10 = scmp.lt.u32.totalorder %s802_s11, %s798_s12  ;;  %p806_p12 = scmp.lt.u32.totalorder %s798_s12, %s1003_s26 }
 0x1b2   : > { %p800_p7 = pnand %p799_p4, %p932_p5 }
 0x1b3   : > { %p805_p11 = por %p804_p10, %p803_p9 }
 0x1b4   : > { %p801_p8 = pneg %p800_p7 }
 0x1b5   : > { %p807_p13 = por %p806_p12, %p805_p11 }
 0x1b7   : > { %p808_p0 = pnand %p807_p13, %p801_p8 }
 0x1b9   : > { %811 = shalt.err (!%p808_p0)
}
 0x1ba   : > { %715 = dma.vmem_to_hbm [thread:$0]  (%p932_p5), %s1005_s18, 128, %s1003_s26, %s578_s25  }
 0x1bb PF: > { %p721_p1 = scmp.ge.s32.totalorder %s846_s24, 2  ;;  %s603_s17 = sand.u32 1, %s834_s21  }
 0x1bc   : > { %s604_s19 = scalar_lea.sflag [#allocation3], %s603_s17 }
 0x1bd   : > { %p718_p2 = pnand %p721_p1, %p936_p6 }
 0x1bf   : > { %829 = dma.done.wait (!%p718_p2), %s604_s19, 128  }
 0x1c0   : > { %831 = vsyncadd (!%p718_p2), %s604_s19, 4294967168  ;;  %p16_p3 = scmp.ge.s32.totalorder %s919_s27, 4   ;;  %s1056_s21 = smov %s838_s22 }
 0x1c1   : > { %s1057_s22 = smov %s842_s23  ;;  %s1058_s23 = smov %s930_s30 }
 0x1c2   : > { %s1059_s24 = smov %s919_s27  ;;  %18 = sbr.rel (!%p16_p3) target bundleno = 3 (0x3), region = 88 }
 0x1c9   :  { %609 = vsyncpa [#allocation3], 1 }
 0x1ca   :  { %611 = vsyncpa [#allocation3 + $0x1], 1 }

</bundles_post_ra>
